<compile_context>
chip_gen: v5e
topology: v5e:2x2
jax: 0.10.0
libtpu: 0.0.40
codegen_flags: <defaults>
</compile_context>

<pallas_src>
import jax
import jax.numpy as jnp
from jax.experimental import pallas as pl
from jax.experimental.pallas import tpu as pltpu


def _round_up(x: int, m: int) -> int:
    return ((x + m - 1) // m) * m


# -----------------------------------------------------------------------------
# Pallas kernel: fused matmul + bias (the Linear inner module), one (TM,TN) tile
# -----------------------------------------------------------------------------
def _linear_kernel(x_ref, w_ref, b_ref, o_ref):
    # x_ref: (TM, H) row tile (compute dtype), w_ref: (H, TN) resident stripe,
    # b_ref: (1, TN) f32 bias, o_ref: (TM, TN) true-width output tile.
    acc = jnp.dot(x_ref[...], w_ref[...], preferred_element_type=jnp.float32)
    o_ref[...] = (acc + b_ref[...]).astype(o_ref.dtype)


def linear_pallas(
    x2d: jax.Array,
    w: jax.Array,
    b: jax.Array,
    *,
    compute_dtype=jnp.bfloat16,
) -> jax.Array:
    """Y = x2d @ w + b with a row-tiled, pipelined Pallas TPU kernel.

    x2d: (N, H), w: (H, F) (PyTorch weight transposed), b: (F,).
    X/W are fed to the MXU in `compute_dtype` (bf16 by default); accumulation
    and the bias add are f32; output is in x2d's dtype.  No padding of N/H/F
    is materialized in HBM: ragged blocks handle the tails.
    """
    n, h = x2d.shape
    h2, f = w.shape
    assert h == h2, (h, h2)
    out_dtype = x2d.dtype
    cdt = jnp.dtype(compute_dtype)
    cbytes = cdt.itemsize
    obytes = jnp.dtype(out_dtype).itemsize

    # Compute-dtype operands; f32 bias for the f32 bias-add.
    # TODO(synk): for layers called repeatedly (scan/loop), keep W/b stored in
    # compute_dtype at parameter setup so these casts disappear entirely.
    x_c = x2d if x2d.dtype == cdt else x2d.astype(cdt)
    w_c = w if w.dtype == cdt else w.astype(cdt)
    b_c = b.reshape(1, f).astype(jnp.float32)

    # Generation-aware VMEM budget (v5e/v6e: 128 MiB physical, v7x: 64 MiB).
    try:
        vmem_cap = int(pltpu.get_tpu_info().vmem_capacity_bytes)
    except Exception:
        vmem_cap = 64 << 20  # most conservative assumption (v7x)
    vmem_limit = min((vmem_cap * 3) // 4, 96 << 20)
    budget = vmem_limit - (4 << 20)

    # ---- F (output-column) tiling: only when W cannot stay VMEM-resident. ----
    tn = f
    w_budget = budget // 2  # leave the other half for X/Y tiles + f32 acc
    if 2 * h * f * cbytes > w_budget and f > 128:
        cand = ((w_budget // (2 * h * cbytes)) // 128) * 128
        tn = int(max(cand, 128))
        if tn >= f:
            tn = f
    # TODO(synk): if even a 128-wide W stripe exceeds VMEM (enormous H), add
    # K-tiling with an f32 acc scratch + pl.when init/finalize.

    # ---- Row tile: large enough to amortize per-step overhead, >= 2 tiles
    # when N allows (keeps both v7x TensorCores busy), sized against VMEM. ----
    sub = 16 if cbytes < 4 else 8  # bf16 packs 16x128 per vreg

    def _tile_bytes(tm: int) -> int:
        return (
            2 * tm * h * cbytes      # X tile, double-buffered
            + 2 * tm * tn * obytes   # Y tile, double-buffered
            + tm * tn * 4            # f32 accumulator temp inside the kernel
            + 2 * h * tn * cbytes    # W stripe, counted at 2x (default pipelining)
            + 2 * tn * 4             # bias (f32), counted at 2x
        )
    # TODO(synk): pipeline_mode=pl.Buffered(1) on the W/b specs would reclaim
    # the phantom second W buffer; kept at 2x accounting here for compile safety.

    if n <= 2 * sub:
        tm = n  # single small tile; full-dim block is always legal
    else:
        tm = min(4096, _round_up(pl.cdiv(n, 2), sub))
    while tm > sub and _tile_bytes(tm) > budget:
        tm = max(sub, _round_up(tm // 2, sub))

    grid = (pl.cdiv(f, tn), pl.cdiv(n, tm))

    cost = pl.CostEstimate(
        flops=2 * n * h * f,
        bytes_accessed=cbytes * (n * h + h * f) + 4 * f + obytes * n * f,
        transcendentals=0,
    )

    out = pl.pallas_call(
        _linear_kernel,
        out_shape=jax.ShapeDtypeStruct((n, f), out_dtype),
        grid_spec=pl.GridSpec(
            grid=grid,
            in_specs=[
                pl.BlockSpec((tm, h), lambda j, i: (i, 0)),   # X: row-tiled
                pl.BlockSpec((h, tn), lambda j, i: (0, j)),   # W: resident / F-stripe
                pl.BlockSpec((1, tn), lambda j, i: (0, j)),   # bias
            ],
            out_specs=pl.BlockSpec((tm, tn), lambda j, i: (i, j)),
        ),
        compiler_params=pltpu.CompilerParams(
            # Independent tiles on both axes -> shard across v7x's two TCs.
            dimension_semantics=("parallel", "parallel"),
            vmem_limit_bytes=int(vmem_limit),
        ),
        cost_estimate=cost,
    )(x_c, w_c, b_c)

    return out


# -----------------------------------------------------------------------------
# TimeDistributed wrapper (glue logic, exact PyTorch semantics)
# -----------------------------------------------------------------------------
def time_distributed_forward(
    input_data: jax.Array,
    w: jax.Array,
    b: jax.Array,
    batch_first: bool = False,
    *,
    compute_dtype=jnp.bfloat16,
) -> jax.Array:
    """Mirrors TimeDistributed.forward with inner module = Linear(H -> F)."""
    if input_data.ndim <= 2:
        return linear_pallas(input_data, w, b, compute_dtype=compute_dtype)

    # reshaped_input_data = input_data.contiguous().view(-1, input.size(-1))
    reshaped = input_data.reshape(-1, input_data.shape[-1])
    module_output = linear_pallas(reshaped, w, b, compute_dtype=compute_dtype)

    output_dim = 1
    if module_output.ndim == 2:
        output_dim = module_output.shape[-1]

    if batch_first:
        return module_output.reshape(
            input_data.shape[0], input_data.shape[1], output_dim
        )
    # PyTorch views the flat buffer as (size(1), size(0), out_dim) —
    # reproduce exactly (a relabel of the flat buffer, not a transpose).
    return module_output.reshape(
        input_data.shape[1], input_data.shape[0], output_dim
    )


# -----------------------------------------------------------------------------
# Demo
# -----------------------------------------------------------------------------
if __name__ == "__main__":
    key = jax.random.PRNGKey(0)
    k_x, k_w, k_b = jax.random.split(key, 3)

    # Inner module: Linear(in_features=32, out_features=16)
    H, F = 32, 16
    # Input sequence: (T=8, B=2, H=32), batch_first=False convention.
    T, B = 8, 2

    x = jax.random.normal(k_x, (T, B, H), dtype=jnp.float32)
    # PyTorch weight is (F, H); we store the transposed (H, F) layout.
    w = jax.random.normal(k_w, (H, F), dtype=jnp.float32) * 0.1
    b = jax.random.normal(k_b, (F,), dtype=jnp.float32) * 0.1

    # Plain-JAX reference of the PyTorch forward (batch_first=False relabel).
    ref_flat = x.reshape(-1, H) @ w + b
    ref = ref_flat.reshape(B, T, F)

    # Default path: bf16 MXU datapath, f32 accumulate (loose tolerance).
    out = time_distributed_forward(x, w, b, batch_first=False)
    out = jax.block_until_ready(out)
    assert out.shape == (B, T, F), out.shape
    assert jnp.allclose(out, ref, atol=5e-2, rtol=5e-2)

    # Exact f32 path (verifies the ragged/tiling machinery at tight tolerance).
    out_f32 = time_distributed_forward(
        x, w, b, batch_first=False, compute_dtype=jnp.float32
    )
    out_f32 = jax.block_until_ready(out_f32)
    assert jnp.allclose(out_f32, ref, atol=1e-5, rtol=1e-5)

    print("KERNEL_OK")
</pallas_src>

<mosaic_0001>
module attributes {stable_mosaic.version = 11 : i64} {
  func.func @_linear_kernel(%arg0: i32, %arg1: i32, %arg2: memref<16x32xbf16, #tpu.memory_space<vmem>>, %arg3: memref<32x16xbf16, #tpu.memory_space<vmem>>, %arg4: memref<1x16xf32, #tpu.memory_space<vmem>>, %arg5: memref<16x16xf32, #tpu.memory_space<vmem>>) attributes {dimension_semantics = [#tpu.dimension_semantics<parallel>, #tpu.dimension_semantics<parallel>], iteration_bounds = array<i64: 1, 1>, scalar_prefetch = 0 : i64, scratch_operands = 0 : i64, tpu.core_type = #tpu.core_type<tc>, window_params = [{transform_indices = @transform_0, window_bounds = array<i64: 16, 32>}, {transform_indices = @transform_1, window_bounds = array<i64: 32, 16>}, {transform_indices = @transform_2, window_bounds = array<i64: 1, 16>}, {transform_indices = @transform_3, window_bounds = array<i64: 16, 16>}]} {
    %c0 = arith.constant 0 : index
    %c0_0 = arith.constant 0 : index
    %0 = vector.load %arg2[%c0, %c0_0] : memref<16x32xbf16, #tpu.memory_space<vmem>>, vector<16x32xbf16>
    %c0_1 = arith.constant 0 : index
    %c0_2 = arith.constant 0 : index
    %1 = vector.load %arg3[%c0_1, %c0_2] : memref<32x16xbf16, #tpu.memory_space<vmem>>, vector<32x16xbf16>
    %cst = arith.constant dense<0.000000e+00> : vector<16x16xf32>
    %2 = tpu.matmul %0, %1, %cst {dimension_numbers = #tpu.dot_dimension_numbers<[1], [0], [0], [1], [0, 0, 1, 1], [], []>} : vector<16x32xbf16>, vector<32x16xbf16>, vector<16x16xf32> -> vector<16x16xf32>
    %c0_3 = arith.constant 0 : index
    %c0_4 = arith.constant 0 : index
    %3 = vector.load %arg4[%c0_3, %c0_4] : memref<1x16xf32, #tpu.memory_space<vmem>>, vector<1x16xf32>
    %4 = vector.broadcast %3 : vector<1x16xf32> to vector<16x16xf32>
    %5 = arith.addf %2, %4 : vector<16x16xf32>
    %c0_5 = arith.constant 0 : index
    %c0_6 = arith.constant 0 : index
    %6 = vector.load %arg5[%c0_5, %c0_6] : memref<16x16xf32, #tpu.memory_space<vmem>>, vector<16x16xf32>
    tpu.vector_store %arg5[%c0_5, %c0_6], %5 {strides = array<i32>} : memref<16x16xf32, #tpu.memory_space<vmem>>, vector<16x16xf32>,
    return
  }
  func.func @transform_0(%arg0: i32, %arg1: i32) -> (i32, i32) {
    %c0_i32 = arith.constant 0 : i32
    %c0_i32_0 = arith.constant 0 : i32
    return %arg1, %c0_i32 : i32, i32
  }
  func.func @transform_1(%arg0: i32, %arg1: i32) -> (i32, i32) {
    %c0_i32 = arith.constant 0 : i32
    %c0_i32_0 = arith.constant 0 : i32
    return %c0_i32, %arg0 : i32, i32
  }
  func.func @transform_2(%arg0: i32, %arg1: i32) -> (i32, i32) {
    %c0_i32 = arith.constant 0 : i32
    %c0_i32_0 = arith.constant 0 : i32
    return %c0_i32, %arg0 : i32, i32
  }
  func.func @transform_3(%arg0: i32, %arg1: i32) -> (i32, i32) {
    %c0_i32 = arith.constant 0 : i32
    return %arg1, %arg0 : i32, i32
  }
}

</mosaic_0001>

<bundles_post_ra>
// kernel: tpu_custom_call.1
= control target key start
LH: loop header
LB: loop body
LE: loop exit
PB: predicated region body
PF: predicated region fallthrough
CT: control target
= control target key end

     0   :  { %s166_s0 = inlined_call_operand.vmem [shape: bf16[16,32], index: 0, kind: input, shape index: {}]   ;;  %s167_s1 = inlined_call_operand.vmem [shape: bf16[32,16], index: 1, kind: input, shape index: {}]   ;;  %s168_s2 = inlined_call_operand.vmem [shape: f32[1,16], index: 2, kind: input, shape index: {}]   ;;  %s169_s3 = inlined_call_operand.hbm [shape: f32[16,16], index: 3, kind: output, shape index: {}]  }
   0x1   :  { %v97_v0 = vld [vmem:[%s167_s1 + $0x8] sm:$0xff] }
   0x2   :  { %8 = vsyncpa [#allocation3], 0  ;;  %53 = vmatpush.bf16.msra.mxu0 %v97_v0  ;;  %v96_v1 = vld [vmem:[%s167_s1] sm:$0xff]  ;;  %vm43_vm0 = vcmask 261120   ;;  %vm61_vm1 = vcmask 130048   ;;  %s128_s20 = smov [#allocation2]  }
   0x3   :  { %v95_v2 = vld [vmem:[%s166_s0] sm:$0xff]  ;;  %s68_s21 = sshll.u32 %s128_s20, 4  ;;  %s70_s1 = sshll.u32 %s169_s3, 4  ;;  %s69_s21 = int_to_ptr.vmem [resolvable:$true] %s68_s21  ;;  %s71_s1 = int_to_ptr.hbm [resolvable:$true] %s70_s1 }
   0x4   :  { %v101_v3 = vld [vmem:[%s168_s2] ss:$0 sm:$0xff]  ;;  %s129_s0 = smov 128   ;;  %s130_s24 = smov 8  }
   0x6   :  { %54 = vmatpush.bf16.msra.mxu0 %v96_v1 }
   0x9   :  { %94 = vmatmul.msk.bf16.vlgmr.msra.gmra.mxu0 %vm43_vm0, %v95_v2 }
  0x86   :  { %v56_v4 = vpop.f32.mrf.mxu0 }
  0x87   :  { %v57_v5 = vadd.f32 %v101_v3, %v56_v4 }
  0x89   :  { %62 = vst.msk [vmem:[#allocation2] sm:$0xff] %vm61_vm1, %v57_v5 }
  0x8e   :  { %v58_v6 = vpop.f32.mrf.mxu0 }
  0x8f   :  { %v59_v7 = vadd.f32 %v101_v3, %v58_v6 }
  0x91   :  { %63 = vst.msk [vmem:[#allocation2 + $0x8] sm:$0xff] %vm61_vm1, %v59_v7 }
  0x92   :  { %76 = dma.vmem_to_hbm [thread:$0]  %s69_s21, 256, %s71_s1, [#allocation3], %s129_s0, %s129_s0, %s130_s24  }
  0x93   :  { %126 = dma.done.wait [#allocation3], 256  }
  0x94   :  { %127 = vsyncadd [#allocation3], 4294967040 }
  0x95   :  { %81 = vsyncpa [#allocation3], 1 }

</bundles_post_ra>
